<compile_context>
chip_gen: v7x
topology: tpu7x:2x2x1
jax: 0.10.0
libtpu: 0.0.40
codegen_flags: <defaults>
</compile_context>

<pallas_src>
import functools

import jax
import jax.numpy as jnp
from jax.experimental import pallas as pl
from jax.experimental.pallas import tpu as pltpu


_MIB = 1024 * 1024

# Per-generation VMEM budget (trace-time query; safe fallback = v7x 64 MiB).
try:
    _info = pltpu.get_tpu_info()
    _VMEM_CAP = int(getattr(_info, "vmem_capacity_bytes", 0)) or 64 * _MIB
except Exception:  # pragma: no cover - e.g. interpret mode / old jax
    _VMEM_CAP = 64 * _MIB
# ~96 MiB on v5e/v6e (128 MiB physical), ~48 MiB on v7x (64 MiB physical).
_VMEM_LIMIT = int(_VMEM_CAP * 0.75)


def _pick_cin_block(cin, hwp, xbytes, budget_bytes):
    """Largest channel block (a multiple of 8 dividing cin, or cin itself)
    whose double-buffered (cin_blk, HWp) input block fits the byte budget."""
    def cost(blk):
        return 2 * blk * hwp * xbytes  # double-buffered x block

    if cost(cin) <= budget_bytes:
        return cin
    cands = [blk for blk in range(8, cin, 8) if cin % blk == 0]
    fitting = [blk for blk in cands if cost(blk) <= budget_bytes]
    if fitting:
        return max(fitting)
    # Nothing fits: use the smallest legal block and let the raised
    # vmem_limit_bytes absorb it.
    return min(cands) if cands else cin


def _make_kernel(H, W, HWp, cout, cin_blk, n_cin):
    """Kernel closure over the static geometry.

    Refs:
      x_ref: (1, cin_blk, HWp)  input slab, flattened spatial on lanes
      w_ref: (9, cout, Cin)     per-tap conv weights (tap t = ky*3 + kx)
      b_ref: (cout, 1)          f32 bias
      m_ref: (4, HWp)           f32 0/1 masks [h>0, h<H-1, w>0, w<W-1]
      o_ref: (1, cout, HWp)     f32 output, resident across the Cin axis
    """

    def kernel(x_ref, w_ref, b_ref, m_ref, o_ref):
        c = pl.program_id(1)

        x = x_ref[0]            # (cin_blk, HWp), native dtype
        m = m_ref[...]          # (4, HWp) f32

        acc = jnp.zeros((cout, HWp), jnp.float32)
        for ky in range(3):
            for kx in range(3):
                t = ky * 3 + kx
                dy, dx = ky - 1, kx - 1

                if n_cin == 1:
                    w_t = w_ref[t]                                   # (cout, Cin)
                else:
                    c0 = pl.multiple_of(c * cin_blk, cin_blk)
                    w_t = w_ref[t, :, pl.ds(c0, cin_blk)]            # (cout, cin_blk)

                # One small MXU matmul on the UNSHIFTED input.
                y = jnp.dot(w_t, x, preferred_element_type=jnp.float32)

                # Shift the 3-row result so y[:, q] holds the contribution of
                # input pixel q + dy*W + dx to output pixel q:
                #   jnp.roll(y, -d)[q] == y[(q + d) % HWp]
                d = dy * W + dx
                if d != 0:
                    y = jnp.roll(y, -d, axis=-1)

                # Zero the taps that fall outside the image (padding=1
                # semantics).  Every roll wrap-around position is also masked,
                # so the modular shift above is safe.
                if dy == -1:
                    y = y * m[0:1]
                if dy == +1:
                    y = y * m[1:2]
                if dx == -1:
                    y = y * m[2:3]
                if dx == +1:
                    y = y * m[3:4]

                acc = acc + y

        if n_cin == 1:
            o_ref[0] = jax.nn.sigmoid(acc + b_ref[...])
        else:
            @pl.when(c == 0)
            def _init():
                o_ref[0] = acc

            @pl.when(c > 0)
            def _accum():
                o_ref[0] = o_ref[0] + acc

            @pl.when(c == n_cin - 1)
            def _finalize():
                o_ref[0] = jax.nn.sigmoid(o_ref[0] + b_ref[...])

    return kernel


@functools.partial(jax.jit, static_argnames=("scale",))
def disp_head_forward(x_nchw, weight, bias, scale=1):
    """DispHead.forward(x1, scale): sigmoid(conv3x3(x1) + bias).

    x_nchw : (B, Cin, H, W)
    weight : (Cout, Cin, 3, 3)   (PyTorch Conv2d layout)
    bias   : (Cout,)
    """
    B, Cin, H, W = x_nchw.shape
    Cout = weight.shape[0]
    assert weight.shape == (Cout, Cin, 3, 3)
    HW = H * W
    HWp = ((HW + 127) // 128) * 128    # lane-dense flattened spatial axis

    # Free reshape (NCHW is contiguous); pad only when HW is not lane-aligned.
    xf = x_nchw.reshape(B, Cin, HW)
    if HWp != HW:
        xf = jnp.pad(xf, ((0, 0), (0, 0), (0, HWp - HW)))

    # Per-tap weights: (ky, kx, Cout, Cin) -> (9, Cout, Cin).
    w9 = jnp.transpose(weight, (2, 3, 0, 1)).reshape(9, Cout, Cin).astype(xf.dtype)
    b2 = bias.astype(jnp.float32).reshape(Cout, 1)

    # Boundary masks over the flattened axis (emulate zero padding=1).
    q = jnp.arange(HWp, dtype=jnp.int32)
    hq, wq = q // W, q % W
    mask = jnp.stack([hq > 0, hq < H - 1, wq > 0, wq < W - 1]).astype(jnp.float32)

    xbytes = xf.dtype.itemsize
    cin_blk = _pick_cin_block(Cin, HWp, xbytes, int(_VMEM_LIMIT * 0.4))
    n_cin = Cin // cin_blk
    grid = (B, n_cin)

    kernel = _make_kernel(H=H, W=W, HWp=HWp, cout=Cout,
                          cin_blk=cin_blk, n_cin=n_cin)

    cost = pl.CostEstimate(
        flops=2 * B * Cout * 9 * Cin * HW,
        transcendentals=B * Cout * HW,
        bytes_accessed=(B * Cin * HWp * xbytes            # x read
                        + B * Cout * HWp * 4              # output write
                        + 9 * Cout * Cin * xbytes         # weights
                        + 4 * HWp * 4 + Cout * 4))        # masks + bias

    out_flat = pl.pallas_call(
        kernel,
        out_shape=jax.ShapeDtypeStruct((B, Cout, HWp), jnp.float32),
        grid_spec=pltpu.PrefetchScalarGridSpec(
            num_scalar_prefetch=0,
            grid=grid,
            in_specs=[
                pl.BlockSpec((1, cin_blk, HWp), lambda b, c: (b, c, 0)),
                pl.BlockSpec((9, Cout, Cin), lambda b, c: (0, 0, 0)),
                pl.BlockSpec((Cout, 1), lambda b, c: (0, 0)),
                pl.BlockSpec((4, HWp), lambda b, c: (0, 0)),
            ],
            out_specs=pl.BlockSpec((1, Cout, HWp), lambda b, c: (b, 0, 0)),
        ),
        compiler_params=pltpu.CompilerParams(
            dimension_semantics=("parallel", "arbitrary"),
            vmem_limit_bytes=_VMEM_LIMIT),
        cost_estimate=cost,
    )(xf, w9, b2, mask)

    out = out_flat[..., :HW].reshape(B, Cout, H, W).astype(x_nchw.dtype)

    if scale > 1:
        # TODO(synk): RLFN_Prune (self.superRE) is not defined in the provided
        # source; the super-resolution branch is not implemented.
        raise NotImplementedError("scale > 1 requires RLFN_Prune (undefined)")
    return out


if __name__ == "__main__":
    key = jax.random.PRNGKey(0)
    k_x, k_w, k_b = jax.random.split(key, 3)

    # Small shapes consistent with the module: B=2, input_dim=8, H=W=16.
    B, Cin, H, W = 2, 8, 16, 16
    Cout = 3

    x = jax.random.normal(k_x, (B, Cin, H, W), dtype=jnp.float32)
    # Deterministic synthetic Conv2d(input_dim, 3, 3, padding=1) params.
    fan_in = Cin * 3 * 3
    bound = 1.0 / (fan_in ** 0.5)
    weight = jax.random.uniform(k_w, (Cout, Cin, 3, 3),
                                minval=-bound, maxval=bound, dtype=jnp.float32)
    bias = jax.random.uniform(k_b, (Cout,), minval=-bound, maxval=bound,
                              dtype=jnp.float32)

    out = disp_head_forward(x, weight, bias, scale=1)
    jax.block_until_ready(out)

    # Pure-JAX f32 reference: conv3x3 (SAME) + bias + sigmoid.
    ref = jax.nn.sigmoid(
        jax.lax.conv_general_dilated(
            x, weight, window_strides=(1, 1), padding="SAME",
            dimension_numbers=("NCHW", "OIHW", "NCHW"),
            precision=jax.lax.Precision.HIGHEST) +
        bias.reshape(1, Cout, 1, 1))

    assert out.shape == (B, Cout, H, W)
    err = float(jnp.max(jnp.abs(out - ref)))
    # f32 matmuls with f32 accumulation: tolerance is tight (headroom left in
    # case the backend chooses bf16-pass matmuls for f32 operands).
    assert err < 1e-2, f"max abs error {err}"

    print("KERNEL_OK")
</pallas_src>

<mosaic_0001>
module attributes {stable_mosaic.version = 11 : i64} {
  func.func @kernel(%arg0: i32, %arg1: i32, %arg2: memref<1x8x256xf32, #tpu.memory_space<vmem>>, %arg3: memref<9x3x8xf32, #tpu.memory_space<vmem>>, %arg4: memref<3x1xf32, #tpu.memory_space<vmem>>, %arg5: memref<4x256xf32, #tpu.memory_space<vmem>>, %arg6: memref<1x3x256xf32, #tpu.memory_space<vmem>>) attributes {dimension_semantics = [#tpu.dimension_semantics<parallel>, #tpu.dimension_semantics<arbitrary>], iteration_bounds = array<i64: 2, 1>, scalar_prefetch = 0 : i64, scratch_operands = 0 : i64, tpu.core_type = #tpu.core_type<tc>, window_params = [{transform_indices = @transform_0, window_bounds = array<i64: 1, 8, 256>}, {pipeline_mode = #tpu.pipeline_mode<synchronous>, transform_indices = @transform_1, window_bounds = array<i64: 9, 3, 8>}, {pipeline_mode = #tpu.pipeline_mode<synchronous>, transform_indices = @transform_2, window_bounds = array<i64: 3, 1>}, {pipeline_mode = #tpu.pipeline_mode<synchronous>, transform_indices = @transform_3, window_bounds = array<i64: 4, 256>}, {transform_indices = @transform_4, window_bounds = array<i64: 1, 3, 256>}]} {
    %c0 = arith.constant 0 : index
    %c0_0 = arith.constant 0 : index
    %c0_1 = arith.constant 0 : index
    %0 = vector.load %arg2[%c0, %c0_0, %c0_1] : memref<1x8x256xf32, #tpu.memory_space<vmem>>, vector<1x8x256xf32>
    %1 = vector.shape_cast %0 : vector<1x8x256xf32> to vector<8x256xf32>
    %c0_2 = arith.constant 0 : index
    %c0_3 = arith.constant 0 : index
    %2 = vector.load %arg5[%c0_2, %c0_3] : memref<4x256xf32, #tpu.memory_space<vmem>>, vector<4x256xf32>
    %cst = arith.constant 0.000000e+00 : f32
    %3 = vector.broadcast %cst : f32 to vector<3x256xf32>
    %c0_4 = arith.constant 0 : index
    %c0_5 = arith.constant 0 : index
    %c0_6 = arith.constant 0 : index
    %4 = vector.load %arg3[%c0_4, %c0_5, %c0_6] : memref<9x3x8xf32, #tpu.memory_space<vmem>>, vector<1x3x8xf32>
    %5 = vector.shape_cast %4 : vector<1x3x8xf32> to vector<3x8xf32>
    %cst_7 = arith.constant dense<0.000000e+00> : vector<3x256xf32>
    %6 = tpu.matmul %5, %1, %cst_7 {dimension_numbers = #tpu.dot_dimension_numbers<[1], [0], [0], [1], [0, 0, 1, 1], [], []>} : vector<3x8xf32>, vector<8x256xf32>, vector<3x256xf32> -> vector<3x256xf32>
    %7 = vector.extract_strided_slice %6 {offsets = [0, 239], sizes = [3, 17], strides = [1, 1]} : vector<3x256xf32> to vector<3x17xf32>
    %8 = vector.extract_strided_slice %6 {offsets = [0, 0], sizes = [3, 239], strides = [1, 1]} : vector<3x256xf32> to vector<3x239xf32>
    %9 = tpu.concatenate %7, %8 in 1 : vector<3x17xf32>, vector<3x239xf32> -> vector<3x256xf32>
    %10 = vector.extract_strided_slice %2 {offsets = [0, 0], sizes = [1, 256], strides = [1, 1]} : vector<4x256xf32> to vector<1x256xf32>
    %11 = vector.broadcast %10 : vector<1x256xf32> to vector<3x256xf32>
    %12 = arith.mulf %9, %11 : vector<3x256xf32>
    %13 = vector.extract_strided_slice %2 {offsets = [2, 0], sizes = [1, 256], strides = [1, 1]} : vector<4x256xf32> to vector<1x256xf32>
    %14 = vector.broadcast %13 : vector<1x256xf32> to vector<3x256xf32>
    %15 = arith.mulf %12, %14 : vector<3x256xf32>
    %16 = arith.addf %3, %15 : vector<3x256xf32>
    %c1 = arith.constant 1 : index
    %c0_8 = arith.constant 0 : index
    %c0_9 = arith.constant 0 : index
    %17 = vector.load %arg3[%c1, %c0_8, %c0_9] : memref<9x3x8xf32, #tpu.memory_space<vmem>>, vector<1x3x8xf32>
    %18 = vector.shape_cast %17 : vector<1x3x8xf32> to vector<3x8xf32>
    %cst_10 = arith.constant dense<0.000000e+00> : vector<3x256xf32>
    %19 = tpu.matmul %18, %1, %cst_10 {dimension_numbers = #tpu.dot_dimension_numbers<[1], [0], [0], [1], [0, 0, 1, 1], [], []>} : vector<3x8xf32>, vector<8x256xf32>, vector<3x256xf32> -> vector<3x256xf32>
    %20 = vector.extract_strided_slice %19 {offsets = [0, 240], sizes = [3, 16], strides = [1, 1]} : vector<3x256xf32> to vector<3x16xf32>
    %21 = vector.extract_strided_slice %19 {offsets = [0, 0], sizes = [3, 240], strides = [1, 1]} : vector<3x256xf32> to vector<3x240xf32>
    %22 = tpu.concatenate %20, %21 in 1 : vector<3x16xf32>, vector<3x240xf32> -> vector<3x256xf32>
    %23 = vector.extract_strided_slice %2 {offsets = [0, 0], sizes = [1, 256], strides = [1, 1]} : vector<4x256xf32> to vector<1x256xf32>
    %24 = vector.broadcast %23 : vector<1x256xf32> to vector<3x256xf32>
    %25 = arith.mulf %22, %24 : vector<3x256xf32>
    %26 = arith.addf %16, %25 : vector<3x256xf32>
    %c2 = arith.constant 2 : index
    %c0_11 = arith.constant 0 : index
    %c0_12 = arith.constant 0 : index
    %27 = vector.load %arg3[%c2, %c0_11, %c0_12] : memref<9x3x8xf32, #tpu.memory_space<vmem>>, vector<1x3x8xf32>
    %28 = vector.shape_cast %27 : vector<1x3x8xf32> to vector<3x8xf32>
    %cst_13 = arith.constant dense<0.000000e+00> : vector<3x256xf32>
    %29 = tpu.matmul %28, %1, %cst_13 {dimension_numbers = #tpu.dot_dimension_numbers<[1], [0], [0], [1], [0, 0, 1, 1], [], []>} : vector<3x8xf32>, vector<8x256xf32>, vector<3x256xf32> -> vector<3x256xf32>
    %30 = vector.extract_strided_slice %29 {offsets = [0, 241], sizes = [3, 15], strides = [1, 1]} : vector<3x256xf32> to vector<3x15xf32>
    %31 = vector.extract_strided_slice %29 {offsets = [0, 0], sizes = [3, 241], strides = [1, 1]} : vector<3x256xf32> to vector<3x241xf32>
    %32 = tpu.concatenate %30, %31 in 1 : vector<3x15xf32>, vector<3x241xf32> -> vector<3x256xf32>
    %33 = vector.extract_strided_slice %2 {offsets = [0, 0], sizes = [1, 256], strides = [1, 1]} : vector<4x256xf32> to vector<1x256xf32>
    %34 = vector.broadcast %33 : vector<1x256xf32> to vector<3x256xf32>
    %35 = arith.mulf %32, %34 : vector<3x256xf32>
    %36 = vector.extract_strided_slice %2 {offsets = [3, 0], sizes = [1, 256], strides = [1, 1]} : vector<4x256xf32> to vector<1x256xf32>
    %37 = vector.broadcast %36 : vector<1x256xf32> to vector<3x256xf32>
    %38 = arith.mulf %35, %37 : vector<3x256xf32>
    %39 = arith.addf %26, %38 : vector<3x256xf32>
    %c3 = arith.constant 3 : index
    %c0_14 = arith.constant 0 : index
    %c0_15 = arith.constant 0 : index
    %40 = vector.load %arg3[%c3, %c0_14, %c0_15] : memref<9x3x8xf32, #tpu.memory_space<vmem>>, vector<1x3x8xf32>
    %41 = vector.shape_cast %40 : vector<1x3x8xf32> to vector<3x8xf32>
    %cst_16 = arith.constant dense<0.000000e+00> : vector<3x256xf32>
    %42 = tpu.matmul %41, %1, %cst_16 {dimension_numbers = #tpu.dot_dimension_numbers<[1], [0], [0], [1], [0, 0, 1, 1], [], []>} : vector<3x8xf32>, vector<8x256xf32>, vector<3x256xf32> -> vector<3x256xf32>
    %43 = vector.extract_strided_slice %42 {offsets = [0, 255], sizes = [3, 1], strides = [1, 1]} : vector<3x256xf32> to vector<3x1xf32>
    %44 = vector.extract_strided_slice %42 {offsets = [0, 0], sizes = [3, 255], strides = [1, 1]} : vector<3x256xf32> to vector<3x255xf32>
    %45 = tpu.concatenate %43, %44 in 1 : vector<3x1xf32>, vector<3x255xf32> -> vector<3x256xf32>
    %46 = vector.extract_strided_slice %2 {offsets = [2, 0], sizes = [1, 256], strides = [1, 1]} : vector<4x256xf32> to vector<1x256xf32>
    %47 = vector.broadcast %46 : vector<1x256xf32> to vector<3x256xf32>
    %48 = arith.mulf %45, %47 : vector<3x256xf32>
    %49 = arith.addf %39, %48 : vector<3x256xf32>
    %c4 = arith.constant 4 : index
    %c0_17 = arith.constant 0 : index
    %c0_18 = arith.constant 0 : index
    %50 = vector.load %arg3[%c4, %c0_17, %c0_18] : memref<9x3x8xf32, #tpu.memory_space<vmem>>, vector<1x3x8xf32>
    %51 = vector.shape_cast %50 : vector<1x3x8xf32> to vector<3x8xf32>
    %cst_19 = arith.constant dense<0.000000e+00> : vector<3x256xf32>
    %52 = tpu.matmul %51, %1, %cst_19 {dimension_numbers = #tpu.dot_dimension_numbers<[1], [0], [0], [1], [0, 0, 1, 1], [], []>} : vector<3x8xf32>, vector<8x256xf32>, vector<3x256xf32> -> vector<3x256xf32>
    %53 = arith.addf %49, %52 : vector<3x256xf32>
    %c5 = arith.constant 5 : index
    %c0_20 = arith.constant 0 : index
    %c0_21 = arith.constant 0 : index
    %54 = vector.load %arg3[%c5, %c0_20, %c0_21] : memref<9x3x8xf32, #tpu.memory_space<vmem>>, vector<1x3x8xf32>
    %55 = vector.shape_cast %54 : vector<1x3x8xf32> to vector<3x8xf32>
    %cst_22 = arith.constant dense<0.000000e+00> : vector<3x256xf32>
    %56 = tpu.matmul %55, %1, %cst_22 {dimension_numbers = #tpu.dot_dimension_numbers<[1], [0], [0], [1], [0, 0, 1, 1], [], []>} : vector<3x8xf32>, vector<8x256xf32>, vector<3x256xf32> -> vector<3x256xf32>
    %57 = vector.extract_strided_slice %56 {offsets = [0, 1], sizes = [3, 255], strides = [1, 1]} : vector<3x256xf32> to vector<3x255xf32>
    %58 = vector.extract_strided_slice %56 {offsets = [0, 0], sizes = [3, 1], strides = [1, 1]} : vector<3x256xf32> to vector<3x1xf32>
    %59 = tpu.concatenate %57, %58 in 1 : vector<3x255xf32>, vector<3x1xf32> -> vector<3x256xf32>
    %60 = vector.extract_strided_slice %2 {offsets = [3, 0], sizes = [1, 256], strides = [1, 1]} : vector<4x256xf32> to vector<1x256xf32>
    %61 = vector.broadcast %60 : vector<1x256xf32> to vector<3x256xf32>
    %62 = arith.mulf %59, %61 : vector<3x256xf32>
    %63 = arith.addf %53, %62 : vector<3x256xf32>
    %c6 = arith.constant 6 : index
    %c0_23 = arith.constant 0 : index
    %c0_24 = arith.constant 0 : index
    %64 = vector.load %arg3[%c6, %c0_23, %c0_24] : memref<9x3x8xf32, #tpu.memory_space<vmem>>, vector<1x3x8xf32>
    %65 = vector.shape_cast %64 : vector<1x3x8xf32> to vector<3x8xf32>
    %cst_25 = arith.constant dense<0.000000e+00> : vector<3x256xf32>
    %66 = tpu.matmul %65, %1, %cst_25 {dimension_numbers = #tpu.dot_dimension_numbers<[1], [0], [0], [1], [0, 0, 1, 1], [], []>} : vector<3x8xf32>, vector<8x256xf32>, vector<3x256xf32> -> vector<3x256xf32>
    %67 = vector.extract_strided_slice %66 {offsets = [0, 15], sizes = [3, 241], strides = [1, 1]} : vector<3x256xf32> to vector<3x241xf32>
    %68 = vector.extract_strided_slice %66 {offsets = [0, 0], sizes = [3, 15], strides = [1, 1]} : vector<3x256xf32> to vector<3x15xf32>
    %69 = tpu.concatenate %67, %68 in 1 : vector<3x241xf32>, vector<3x15xf32> -> vector<3x256xf32>
    %70 = vector.extract_strided_slice %2 {offsets = [1, 0], sizes = [1, 256], strides = [1, 1]} : vector<4x256xf32> to vector<1x256xf32>
    %71 = vector.broadcast %70 : vector<1x256xf32> to vector<3x256xf32>
    %72 = arith.mulf %69, %71 : vector<3x256xf32>
    %73 = vector.extract_strided_slice %2 {offsets = [2, 0], sizes = [1, 256], strides = [1, 1]} : vector<4x256xf32> to vector<1x256xf32>
    %74 = vector.broadcast %73 : vector<1x256xf32> to vector<3x256xf32>
    %75 = arith.mulf %72, %74 : vector<3x256xf32>
    %76 = arith.addf %63, %75 : vector<3x256xf32>
    %c7 = arith.constant 7 : index
    %c0_26 = arith.constant 0 : index
    %c0_27 = arith.constant 0 : index
    %77 = vector.load %arg3[%c7, %c0_26, %c0_27] : memref<9x3x8xf32, #tpu.memory_space<vmem>>, vector<1x3x8xf32>
    %78 = vector.shape_cast %77 : vector<1x3x8xf32> to vector<3x8xf32>
    %cst_28 = arith.constant dense<0.000000e+00> : vector<3x256xf32>
    %79 = tpu.matmul %78, %1, %cst_28 {dimension_numbers = #tpu.dot_dimension_numbers<[1], [0], [0], [1], [0, 0, 1, 1], [], []>} : vector<3x8xf32>, vector<8x256xf32>, vector<3x256xf32> -> vector<3x256xf32>
    %80 = vector.extract_strided_slice %79 {offsets = [0, 16], sizes = [3, 240], strides = [1, 1]} : vector<3x256xf32> to vector<3x240xf32>
    %81 = vector.extract_strided_slice %79 {offsets = [0, 0], sizes = [3, 16], strides = [1, 1]} : vector<3x256xf32> to vector<3x16xf32>
    %82 = tpu.concatenate %80, %81 in 1 : vector<3x240xf32>, vector<3x16xf32> -> vector<3x256xf32>
    %83 = vector.extract_strided_slice %2 {offsets = [1, 0], sizes = [1, 256], strides = [1, 1]} : vector<4x256xf32> to vector<1x256xf32>
    %84 = vector.broadcast %83 : vector<1x256xf32> to vector<3x256xf32>
    %85 = arith.mulf %82, %84 : vector<3x256xf32>
    %86 = arith.addf %76, %85 : vector<3x256xf32>
    %c8 = arith.constant 8 : index
    %c0_29 = arith.constant 0 : index
    %c0_30 = arith.constant 0 : index
    %87 = vector.load %arg3[%c8, %c0_29, %c0_30] : memref<9x3x8xf32, #tpu.memory_space<vmem>>, vector<1x3x8xf32>
    %88 = vector.shape_cast %87 : vector<1x3x8xf32> to vector<3x8xf32>
    %cst_31 = arith.constant dense<0.000000e+00> : vector<3x256xf32>
    %89 = tpu.matmul %88, %1, %cst_31 {dimension_numbers = #tpu.dot_dimension_numbers<[1], [0], [0], [1], [0, 0, 1, 1], [], []>} : vector<3x8xf32>, vector<8x256xf32>, vector<3x256xf32> -> vector<3x256xf32>
    %90 = vector.extract_strided_slice %89 {offsets = [0, 17], sizes = [3, 239], strides = [1, 1]} : vector<3x256xf32> to vector<3x239xf32>
    %91 = vector.extract_strided_slice %89 {offsets = [0, 0], sizes = [3, 17], strides = [1, 1]} : vector<3x256xf32> to vector<3x17xf32>
    %92 = tpu.concatenate %90, %91 in 1 : vector<3x239xf32>, vector<3x17xf32> -> vector<3x256xf32>
    %93 = vector.extract_strided_slice %2 {offsets = [1, 0], sizes = [1, 256], strides = [1, 1]} : vector<4x256xf32> to vector<1x256xf32>
    %94 = vector.broadcast %93 : vector<1x256xf32> to vector<3x256xf32>
    %95 = arith.mulf %92, %94 : vector<3x256xf32>
    %96 = vector.extract_strided_slice %2 {offsets = [3, 0], sizes = [1, 256], strides = [1, 1]} : vector<4x256xf32> to vector<1x256xf32>
    %97 = vector.broadcast %96 : vector<1x256xf32> to vector<3x256xf32>
    %98 = arith.mulf %95, %97 : vector<3x256xf32>
    %99 = arith.addf %86, %98 : vector<3x256xf32>
    %c0_32 = arith.constant 0 : index
    %c0_33 = arith.constant 0 : index
    %100 = vector.load %arg4[%c0_32, %c0_33] : memref<3x1xf32, #tpu.memory_space<vmem>>, vector<3x1xf32>
    %101 = vector.broadcast %100 : vector<3x1xf32> to vector<3x256xf32>
    %102 = arith.addf %99, %101 : vector<3x256xf32>
    %103 = arith.negf %102 : vector<3x256xf32>
    %104 = math.exp %103 : vector<3x256xf32>
    %cst_34 = arith.constant 1.000000e+00 : f32
    %105 = vector.broadcast %cst_34 : f32 to vector<3x256xf32>
    %106 = arith.addf %105, %104 : vector<3x256xf32>
    %107 = arith.divf %105, %106 : vector<3x256xf32>
    %c0_35 = arith.constant 0 : index
    %c0_36 = arith.constant 0 : index
    %c0_37 = arith.constant 0 : index
    %108 = vector.load %arg6[%c0_35, %c0_36, %c0_37] : memref<1x3x256xf32, #tpu.memory_space<vmem>>, vector<1x3x256xf32>
    %109 = vector.shape_cast %108 : vector<1x3x256xf32> to vector<3x256xf32>
    %110 = vector.shape_cast %107 : vector<3x256xf32> to vector<1x3x256xf32>
    tpu.vector_store %arg6[%c0_35, %c0_36, %c0_37], %110 {strides = array<i32>} : memref<1x3x256xf32, #tpu.memory_space<vmem>>, vector<1x3x256xf32>,
    return
  }
  func.func @transform_0(%arg0: i32, %arg1: i32) -> (i32, i32, i32) {
    %c0_i32 = arith.constant 0 : i32
    %c0_i32_0 = arith.constant 0 : i32
    return %arg0, %arg1, %c0_i32 : i32, i32, i32
  }
  func.func @transform_1(%arg0: i32, %arg1: i32) -> (i32, i32, i32) {
    %c0_i32 = arith.constant 0 : i32
    %c0_i32_0 = arith.constant 0 : i32
    %c0_i32_1 = arith.constant 0 : i32
    %c0_i32_2 = arith.constant 0 : i32
    return %c0_i32, %c0_i32_0, %c0_i32_1 : i32, i32, i32
  }
  func.func @transform_2(%arg0: i32, %arg1: i32) -> (i32, i32) {
    %c0_i32 = arith.constant 0 : i32
    %c0_i32_0 = arith.constant 0 : i32
    %c0_i32_1 = arith.constant 0 : i32
    return %c0_i32, %c0_i32_0 : i32, i32
  }
  func.func @transform_3(%arg0: i32, %arg1: i32) -> (i32, i32) {
    %c0_i32 = arith.constant 0 : i32
    %c0_i32_0 = arith.constant 0 : i32
    %c0_i32_1 = arith.constant 0 : i32
    return %c0_i32, %c0_i32_0 : i32, i32
  }
  func.func @transform_4(%arg0: i32, %arg1: i32) -> (i32, i32, i32) {
    %c0_i32 = arith.constant 0 : i32
    %c0_i32_0 = arith.constant 0 : i32
    %c0_i32_1 = arith.constant 0 : i32
    return %arg0, %c0_i32, %c0_i32_0 : i32, i32, i32
  }
}

</mosaic_0001>

<bundles_post_ra>
// kernel: disp_head_forward.1
= control target key start
LH: loop header
LB: loop body
LE: loop exit
PB: predicated region body
PF: predicated region fallthrough
CT: control target
= control target key end

     0   :  { %s1353_s15 = smov 0   ;;  %s1355_s16 = smov 0   ;;  %s1458_s0 = inlined_call_operand.vmem [shape: f32[2,8,256], index: 0, kind: input, shape index: {}]   ;;  %s1459_s1 = inlined_call_operand.vmem [shape: f32[9,3,8], index: 1, kind: input, shape index: {}]   ;;  %s1460_s2 = inlined_call_operand.vmem [shape: f32[3,1], index: 2, kind: input, shape index: {}]   ;;  %s1461_s3 = inlined_call_operand.vmem [shape: f32[4,256], index: 3, kind: input, shape index: {}]   ;;  %s1462_s4 = inlined_call_operand.vmem [shape: f32[2,3,256], index: 4, kind: output, shape index: {}]  }
   0x1   :  { %s1357_s17 = smov 0  }
   0x2 LB: > { %s26_s18 = sadd.s32 1, %s1312_s16  ;;  %p1223_p0 = scmp.ge.s32.totalorder %s1316_s17, 1  ;;  %s1316_s17 = sphi %s1357_s17, %s14_s17   ;;  %s1312_s16 = sphi %s1355_s16, %s1464_s16   ;;  %s1308_s15 = sphi %s1353_s15, %s1463_s15  }
   0x3   : > { %p28_p1 = scmp.ge.s32.totalorder %s26_s18, 2  ;;  %p180_p2 = scmp.lt.s32.totalorder %s1316_s17, 3 }
   0x5   : > { %s1466_s18 = smov (%p28_p1, %s26_s18), 0  ;;  %p181_p3 = pnand %p1223_p0, %p180_p2 }
   0x6   : > { %p210_p4 = scmp.lt.s32.totalorder (!%p181_p3), %s1308_s15, 1  ;;  %v1318_v0 = vmov (!%p181_p3), 0.0   ;;  %v227_v1 = vld [vmem:[%s1459_s1] sm:$0x7] (!%p181_p3)  ;;  %vm228_vm0 = vcmask (!%p181_p3), 64512   ;;  %v1319_v12 = vmov (!%p181_p3), 0   ;;  %v316_v32 = vlaneseq (!%p181_p3) }
   0x7   : > { %184 = sbr.rel (%p181_p3) target bundleno = 424 (0x1a8), region = 36  ;;  %296 = vmatprep.mubr.f32.mxu0 (!%p181_p3), %v1318_v0  ;;  %427 = vmatprep.mubr.f32.mxu1 (!%p181_p3), %v1318_v0  ;;  %v1229_v4 = vld [vmem:[%s1459_s1 + $0x4] sm:$0x7] (!%p181_p3)  ;;  %v1231_v5 = vld [vmem:[%s1459_s1 + $0x8] sm:$0x7] (!%p181_p3)  ;;  %s1321_s20 = smov (!%p181_p3), 17  }
   0x8   : > { %v1233_v6 = vld [vmem:[%s1459_s1 + $0xc] sm:$0x7] (!%p181_p3)  ;;  %v1235_v7 = vld [vmem:[%s1459_s1 + $0x10] sm:$0x7] (!%p181_p3)  ;;  %v1237_v8 = vld [vmem:[%s1459_s1 + $0x14] sm:$0x7] (!%p181_p3)  ;;  %1285 = vset.pattern.permute.xlu0 (!%p181_p3), %v1319_v12 }
   0x9   : > { %v1239_v9 = vld [vmem:[%s1459_s1 + $0x18] sm:$0x7] (!%p181_p3)  ;;  %v1241_v10 = vld [vmem:[%s1459_s1 + $0x1c] sm:$0x7] (!%p181_p3)  ;;  %v1243_v11 = vld [vmem:[%s1459_s1 + $0x20] sm:$0x7] (!%p181_p3) }
   0xa   : > { %s1322_s21 = smov (!%p181_p3), 15   ;;  %s1324_s23 = smov (!%p181_p3), 127   ;;  %v1122_v31 = vld [vmem:[%s1460_s2] sm:$0x7] (!%p181_p3)  ;;  %v317_v33 = vshrl.u32 (!%p181_p3), %v316_v32, 7  ;;  %vm310_vm1 = vcmask (!%p181_p3), 138240  }
   0xb   : > { %s1325_s24 = smov (!%p181_p3), 113   ;;  %s1326_s25 = smov (!%p181_p3), 112   ;;  %v1423_v37 = vld [vmem:[%s1461_s3] sm:$0xff] (!%p181_p3)  ;;  %vm533_vm2 = vcmask (!%p181_p3), 121856   ;;  %vm441_vm3 = vcmask (!%p181_p3), 130048   ;;  %vm645_vm4 = vcmask (!%p181_p3), 7168  }
   0xc   : > { %s1327_s26 = smov (!%p181_p3), 111   ;;  %v318_v36 = vsub.s32 (!%p181_p3), 0, %v317_v33  ;;  %v322_v38 = vsub.s32 (!%p181_p3), 4, %v317_v33  ;;  %v338_v43 = vsub.s32 (!%p181_p3), 2, %v317_v33  ;;  %v342_v44 = vsub.s32 (!%p181_p3), 6, %v317_v33 }
   0xd   : > { %v542_v46 = vsub.s32 (!%p181_p3), 3, %v317_v33  ;;  %v546_v47 = vsub.s32 (!%p181_p3), 7, %v317_v33  ;;  %vm906_vm5 = vcmask (!%p181_p3), 924672   ;;  %vm814_vm6 = vcmask (!%p181_p3), 1039360  }
   0xe   : > { %s1468_s15 = smov (!%p210_p4, %s1308_s15), 1  ;;  %v319_v41 = vrot.slane %v1423_v37, %v318_v36  ;;  %v323_v42 = vrot.slane %v1423_v37, %v322_v38  ;;  %v339_v51 = vrot.slane %v1423_v37, %v338_v43  ;;  %v343_v52 = vrot.slane %v1423_v37, %v342_v44 }
   0xf   : > { %s1249_s19 = sshll.u32 %s1468_s15, 4  ;;  %v543_v55 = vrot.slane %v1423_v37, %v542_v46  ;;  %v547_v56 = vrot.slane %v1423_v37, %v546_v47  ;;  %vm1110_vm7 = vcmask 908288   ;;  %vm1018_vm8 = vcmask 916480   ;;  %s1250_s5 = sshll.u32 %s1468_s15, 3 }
  0x10   : > { %s218_s22 = scalar_lea.vmem %s1458_s0, %s1249_s19  ;;  %s1320_s19 = smov 16   ;;  %v329_v49 = vrot.slane %v319_v41, %v318_v36  ;;  %v333_v50 = vrot.slane %v323_v42, %v318_v36  ;;  %v349_v61 = vrot.slane %v339_v51, %v338_v43  ;;  %v353_v62 = vrot.slane %v343_v52, %v338_v43 }
  0x11   : > { %v225_v2 = vld [vmem:[%s218_s22 + $0x8] sm:$0xff]  ;;  %v224_v3 = vld [vmem:[%s218_s22] sm:$0xff]  ;;  %s1323_s22 = smov 1   ;;  %s223_s8 = scalar_lea.vmem %s1462_s4, %s1250_s5 }
  0x12   : > { %232 = vmatprep.subr.mxu0 %v225_v2  ;;  %363 = vmatprep.subr.mxu1 %v225_v2 }
  0x13   : > { %233 = vmatpush1.msra.mxu0 %v224_v3  ;;  %364 = vmatpush1.msra.mxu1 %v224_v3 }
  0x14   : > { %1228 = vmatmul.mubr.msk.f32.vlgmr.msra.gmra.mrb[0].mxu0 %vm228_vm0, %v227_v1  ;;  %1230 = vmatmul.mubr.msk.f32.vlgmr.msra.gmra.mrb[0].mxu1 %vm228_vm0, %v1229_v4  ;;  %v1433_v4 = vrot.slane %v547_v56, %v542_v46 }
  0x15   : > { %455 = vmatprep.subr.mxu0 %v225_v2  ;;  %519 = vmatprep.mubr.f32.mxu0 %v1318_v0 }
  0x16   : > { %456 = vmatpush1.msra.mxu0 %v224_v3  ;;  %567 = vmatprep.subr.mxu1 %v225_v2 }
  0x17   : > { %568 = vmatpush1.msra.mxu1 %v224_v3  ;;  %631 = vmatprep.mubr.f32.mxu1 %v1318_v0 }
  0x18   : > { %1232 = vmatmul.mubr.msk.f32.vlgmr.msra.gmra.mrb[2].mxu0 %vm228_vm0, %v1231_v5  ;;  %1234 = vmatmul.mubr.msk.f32.vlgmr.msra.gmra.mrb[2].mxu1 %vm228_vm0, %v1233_v6 }
  0x19   : > { %659 = vmatprep.subr.mxu0 %v225_v2  ;;  %737 = vmatprep.subr.mxu1 %v225_v2 }
  0x1a   : > { %660 = vmatpush1.msra.mxu0 %v224_v3  ;;  %738 = vmatpush1.msra.mxu1 %v224_v3 }
  0x1b   : > { %723 = vmatprep.mubr.f32.mxu0 %v1318_v0  ;;  %801 = vmatprep.mubr.f32.mxu1 %v1318_v0 }
  0x1c   : > { %1236 = vmatmul.mubr.msk.f32.vlgmr.msra.gmra.mrb[4].mxu0 %vm228_vm0, %v1235_v7  ;;  %1238 = vmatmul.mubr.msk.f32.vlgmr.msra.gmra.mrb[4].mxu1 %vm228_vm0, %v1237_v8 }
  0x1d   : > { %829 = vmatprep.subr.mxu0 %v225_v2  ;;  %893 = vmatprep.mubr.f32.mxu0 %v1318_v0 }
  0x1e   : > { %830 = vmatpush1.msra.mxu0 %v224_v3  ;;  %941 = vmatprep.subr.mxu1 %v225_v2 }
  0x1f   : > { %942 = vmatpush1.msra.mxu1 %v224_v3  ;;  %1005 = vmatprep.mubr.f32.mxu1 %v1318_v0 }
  0x20   : > { %1240 = vmatmul.mubr.msk.f32.vlgmr.msra.gmra.mrb[6].mxu0 %vm228_vm0, %v1239_v9  ;;  %1242 = vmatmul.mubr.msk.f32.vlgmr.msra.gmra.mrb[6].mxu1 %vm228_vm0, %v1241_v10  ;;  %v914_v9 = vsub.s32 1, %v317_v33  ;;  %v918_v10 = vsub.s32 5, %v317_v33 }
  0x21   : > { %1033 = vmatprep.subr.mxu0 %v225_v2  ;;  %1097 = vmatprep.mubr.f32.mxu0 %v1318_v0 }
  0x22   : > { %1034 = vmatpush1.msra.mxu0 %v224_v3  ;;  %v1431_v3 = vrot.slane %v543_v55, %v542_v46 }
  0x24   : > { %1244 = vmatmul.mubr.msk.f32.vlgmr.msra.gmra.mrb[8].mxu0 %vm228_vm0, %v1243_v11 }
  0xe7   : > { %v298_v13 = vpop.f32.mrb[0].mxu0  ;;  %v429_v14 = vpop.f32.mrb[0].mxu1 }
  0xe8   : > { %439 = vrot.lane.b32.xlu1 %v429_v14, %s1320_s19  ;;  %308 = vrot.lane.b32.xlu0 %v298_v13, %s1321_s20  ;;  %v300_v15 = vpop.f32.mrb[1].mxu0  ;;  %v431_v16 = vpop.f32.mrb[1].mxu1 }
  0xeb   : > { %v521_v17 = vpop.f32.mrb[2].mxu0  ;;  %v633_v18 = vpop.f32.mrb[2].mxu1 }
  0xec   : > { %435 = vrot.lane.b32.xlu1 %v431_v16, %s1320_s19  ;;  %304 = vrot.lane.b32.xlu0 %v300_v15, %s1321_s20  ;;  %v523_v19 = vpop.f32.mrb[3].mxu0  ;;  %v635_v20 = vpop.f32.mrb[3].mxu1 }
  0xef   : > { %v1413_v21 = vpop.f32.mrb[4].mxu0  ;;  %v803_v22 = vpop.f32.mrb[4].mxu1 }
  0xf0   : > { %531 = vrot.lane.b32.xlu1 %v521_v17, %s1322_s21  ;;  %527 = vrot.lane.b32.xlu0 %v523_v19, %s1322_s21  ;;  %v1415_v23 = vpop.f32.mrb[5].mxu0  ;;  %v805_v24 = vpop.f32.mrb[5].mxu1 }
  0xf3   : > { %v895_v25 = vpop.f32.mrb[6].mxu0  ;;  %v1007_v26 = vpop.f32.mrb[6].mxu1 }
  0xf4   : > { %643 = vrot.lane.b32.xlu1 %v633_v18, %s1323_s22  ;;  %639 = vrot.lane.b32.xlu0 %v635_v20, %s1323_s22  ;;  %v897_v27 = vpop.f32.mrb[7].mxu0  ;;  %v1009_v28 = vpop.f32.mrb[7].mxu1 }
  0xf7   : > { %v1099_v29 = vpop.f32.mrb[8].mxu0 }
  0xf8   : > { %812 = vrot.lane.b32.xlu1 %v805_v24, %s1324_s23  ;;  %810 = vrot.lane.b32.xlu0 %v803_v22, %s1324_s23  ;;  %v1101_v30 = vpop.f32.mrb[9].mxu0 }
  0xfc   : > { %902 = vrot.lane.b32.xlu0 %v895_v25, %s1325_s24  ;;  %904 = vrot.lane.b32.xlu1 %v897_v27, %s1325_s24  ;;  %v915_v25 = vrot.slane %v1423_v37, %v914_v9 }
  0xfe   : > { %v925_v33 = vrot.slane %v915_v25, %v914_v9 }
 0x100   : > { %1014 = vrot.lane.b32.xlu0 %v1007_v26, %s1326_s25  ;;  %1016 = vrot.lane.b32.xlu1 %v1009_v28, %s1326_s25  ;;  %v919_v26 = vrot.slane %v1423_v37, %v918_v10 }
 0x104   : > { %1106 = vrot.lane.b32.xlu0 %v1099_v29, %s1327_s26  ;;  %1108 = vrot.lane.b32.xlu1 %v1101_v30, %s1327_s26 }
 0x108   : > { %1125 = vperm.xlu0 %1285, %v1122_v31  }
 0x15a   : > { %v440_v34 = vpop.permute.xlu1 %439  ;;  %v309_v35 = vpop.permute.xlu0 %308 }
 0x15e   : > { %v436_v39 = vpop.permute.xlu1 %435  ;;  %v305_v40 = vpop.permute.xlu0 %304 }
 0x15f   : > { %v311_v53 = vsel %vm310_vm1, %v309_v35, %v305_v40  ;;  %v314_v54 = vsel %vm310_vm1, %v305_v40, %v309_v35  ;;  %v442_v1 = vsel %vm441_vm3, %v440_v34, %v436_v39  ;;  %v445_v2 = vsel %vm441_vm3, %v436_v39, %v440_v34 }
 0x160   : > { %v334_v63 = vmul.f32 %v329_v49, %v314_v54  ;;  %v335_v0 = vmul.f32 %v333_v50, %v311_v53  ;;  %v446_v11 = vmul.f32 %v445_v2, %v329_v49  ;;  %v447_v12 = vmul.f32 %v442_v1, %v333_v50 }
 0x161   : > { %v929_v34 = vrot.slane %v919_v26, %v914_v9 }
 0x162   : > { %v532_v45 = vpop.permute.xlu1 %531  ;;  %v528_v48 = vpop.permute.xlu0 %527  ;;  %v354_v13 = vmul.f32 %v349_v61, %v334_v63  ;;  %v355_v14 = vmul.f32 %v353_v62, %v335_v0 }
 0x163   : > { %v534_v59 = vsel %vm533_vm2, %v532_v45, %v528_v48  ;;  %v537_v60 = vsel %vm533_vm2, %v528_v48, %v532_v45 }
 0x164   : > { %v538_v5 = vmul.f32 %v537_v60, %v329_v49  ;;  %v539_v6 = vmul.f32 %v534_v59, %v333_v50  ;;  %v448_v22 = vadd.f32 %v446_v11, %v354_v13  ;;  %v449_v24 = vadd.f32 %v447_v12, %v355_v14 }
 0x166   : > { %v644_v57 = vpop.permute.xlu1 %643  ;;  %v640_v58 = vpop.permute.xlu0 %639  ;;  %v558_v15 = vmul.f32 %v1431_v3, %v538_v5  ;;  %v559_v16 = vmul.f32 %v1433_v4, %v539_v6 }
 0x167   : > { %v646_v19 = vsel %vm645_vm4, %v644_v57, %v640_v58  ;;  %v649_v20 = vsel %vm645_vm4, %v640_v58, %v644_v57 }
 0x168   : > { %v560_v27 = vadd.f32 %v558_v15, %v448_v22  ;;  %v561_v28 = vadd.f32 %v559_v16, %v449_v24  ;;  %v650_v29 = vmul.f32 %v649_v20, %v349_v61  ;;  %v651_v30 = vmul.f32 %v646_v19, %v353_v62 }
 0x16a   : > { %v813_v7 = vpop.permute.xlu1 %812  ;;  %v811_v8 = vpop.permute.xlu0 %810  ;;  %v652_v38 = vadd.f32 %v650_v29, %v560_v27  ;;  %v653_v39 = vadd.f32 %v651_v30, %v561_v28 }
 0x16b   : > { %v815_v40 = vsel %vm814_vm6, %v811_v8, %v813_v7  ;;  %v819_v41 = vsel %vm814_vm6, %v813_v7, %v811_v8 }
 0x16c   : > { %v730_v45 = vadd.f32 %v1413_v21, %v652_v38  ;;  %v731_v46 = vadd.f32 %v1415_v23, %v653_v39  ;;  %v820_v47 = vmul.f32 %v815_v40, %v1431_v3  ;;  %v821_v48 = vmul.f32 %v819_v41, %v1433_v4 }
 0x16e   : > { %v903_v17 = vpop.permute.xlu0 %902  ;;  %v905_v18 = vpop.permute.xlu1 %904  ;;  %v822_v55 = vadd.f32 %v820_v47, %v730_v45  ;;  %v823_v56 = vadd.f32 %v821_v48, %v731_v46 }
 0x16f   : > { %v907_v35 = vsel %vm906_vm5, %v903_v17, %v905_v18  ;;  %v911_v36 = vsel %vm906_vm5, %v905_v18, %v903_v17 }
 0x170   : > { %v930_v42 = vmul.f32 %v925_v33, %v907_v35  ;;  %v931_v43 = vmul.f32 %v929_v34, %v911_v36 }
 0x172   : > { %v1015_v31 = vpop.permute.xlu0 %1014  ;;  %v1017_v32 = vpop.permute.xlu1 %1016  ;;  %v932_v51 = vmul.f32 %v930_v42, %v349_v61  ;;  %v933_v52 = vmul.f32 %v931_v43, %v353_v62 }
 0x173   : > { %v1019_v53 = vsel %vm1018_vm8, %v1015_v31, %v1017_v32  ;;  %v1023_v54 = vsel %vm1018_vm8, %v1017_v32, %v1015_v31 }
 0x174   : > { %v1024_v59 = vmul.f32 %v1019_v53, %v925_v33  ;;  %v1025_v60 = vmul.f32 %v1023_v54, %v929_v34  ;;  %v934_v63 = vadd.f32 %v932_v51, %v822_v55  ;;  %v935_v21 = vadd.f32 %v933_v52, %v823_v56 }
 0x176   : > { %v1107_v44 = vpop.permute.xlu0 %1106  ;;  %v1109_v37 = vpop.permute.xlu1 %1108  ;;  %v1026_v1 = vadd.f32 %v1024_v59, %v934_v63  ;;  %v1027_v2 = vadd.f32 %v1025_v60, %v935_v21 }
 0x177   : > { %v1111_v49 = vsel %vm1110_vm7, %v1107_v44, %v1109_v37  ;;  %v1115_v50 = vsel %vm1110_vm7, %v1109_v37, %v1107_v44 }
 0x178   : > { %v1116_v57 = vmul.f32 %v1111_v49, %v925_v33  ;;  %v1117_v58 = vmul.f32 %v1115_v50, %v929_v34 }
 0x17a   : > { %v1118_v23 = vmul.f32 %v1116_v57, %v1431_v3  ;;  %v1119_v0 = vmul.f32 %v1117_v58, %v1433_v4 }
 0x17c   : > { %v1120_v5 = vadd.f32 %v1118_v23, %v1026_v1  ;;  %v1121_v61 = vadd.f32 %v1119_v0, %v1027_v2 }
 0x187   : > { %v1126_v62 = vpop.permute.xlu0 %1125 }
 0x188   : > { %v1128_v6 = vadd.f32 %v1126_v62, %v1120_v5  ;;  %v1129_v7 = vadd.f32 %v1126_v62, %v1121_v61 }
 0x18a   : > { %v1245_v8 = vmul.f32 -1.442695, %v1128_v6  ;;  %v1246_v9 = vmul.f32 -1.442695, %v1129_v7 }
 0x18c   : > { %1286 = vpow2.f32 %v1245_v8 }
 0x18d   : > { %1288 = vpow2.f32 %v1246_v9 }
 0x196   : > { %v1287_v10 = vpop.eup %1286 }
 0x197   : > { %v1289_v11 = vpop.eup %1288  ;;  %v1136_v12 = vadd.f32 1.0, %v1287_v10 }
 0x198   : > { %v1137_v13 = vadd.f32 1.0, %v1289_v11 }
 0x199   : > { %1290 = vrcp.f32 %v1136_v12 }
 0x19a   : > { %1292 = vrcp.f32 %v1137_v13 }
 0x1a3   : > { %v1291_v3 = vpop.eup %1290 }
 0x1a4   : > { %v1293_v4 = vpop.eup %1292 }
 0x1a5   : > { %v1144_v14 = vcombine.low %v1291_v3, %v1293_v4 }
 0x1a7   : > { %1146 = vst [vmem:[%s223_s8] sm:$0x77] %v1144_v14 }
 0x1a8 PF: > { %s14_s17 = sadd.s32 1, %s1316_s17   ;;  %s1463_s15 = smov %s1312_s16 }
 0x1a9   : > { %p11_p5 = scmp.ge.s32.totalorder %s14_s17, 4   ;;  %s1464_s16 = smov %s1466_s18 }
 0x1ab   :  { %13 = sbr.rel (!%p11_p5) target bundleno = 2 (0x2), region = 74 }

</bundles_post_ra>
